<compile_context>
chip_gen: v7x
topology: tpu7x:2x2x1
jax: 0.10.0
libtpu: 0.0.40
codegen_flags: <defaults>
</compile_context>

<pallas_src>
from functools import partial
from itertools import combinations

import numpy as np
import jax
import jax.numpy as jnp
from jax.experimental import pallas as pl
from jax.experimental.pallas import tpu as pltpu


def _cdiv(a, b):
    return -(-a // b)


def _round_up(a, b):
    return _cdiv(a, b) * b


# -----------------------------------------------------------------------------
# Triplet selector glue (AllTripletSelector from the KPGNN codebase).
# TODO(synk): triplet selection (combinatorics over integer labels) stays on
#             the host; there is no clean Pallas equivalent.
# -----------------------------------------------------------------------------
def all_triplets(labels_np: np.ndarray) -> np.ndarray:
    triplets = []
    for label in sorted(set(labels_np.tolist())):
        label_mask = labels_np == label
        label_indices = np.where(label_mask)[0]
        if len(label_indices) < 2:
            continue
        negative_indices = np.where(np.logical_not(label_mask))[0]
        anchor_positives = list(combinations(label_indices, 2))
        triplets += [[ap[0], ap[1], neg]
                     for ap in anchor_positives for neg in negative_indices]
    return np.asarray(triplets, dtype=np.int32)


def _num_tensorcores() -> int:
    """TensorCores per chip (v7x: 2). Conservative fallback: 1 (v5e/v6e)."""
    try:
        info = pltpu.get_tpu_info()
    except Exception:
        return 1
    for name in ("num_tensorcores", "tensorcore_count", "num_cores",
                 "core_count"):
        n = getattr(info, name, None)
        if n is None:
            continue
        try:
            n = int(n)
        except (TypeError, ValueError):
            continue
        if n >= 1:
            return n
    return 1


# -----------------------------------------------------------------------------
# Strategy 1 (small B): MXU gather.  One grid step = `tile` triplets, lane-dense.
#   e_hbm   : (D, 3B) bf16  stacked bf16x3 embedding components, left in HBM
#   idx_ref : (3, tile) i32 anchor / positive / negative row indices
#   acc_ref : (1, tile) f32 per-core running per-lane loss sums (resident block)
#   e_vmem  : (D, 3B) bf16  single-buffered VMEM copy of e_hbm
# -----------------------------------------------------------------------------
def _mxu_gather_kernel(e_hbm, idx_ref, acc_ref, e_vmem, *,
                       margin, total, tile, steps):
    c = pl.program_id(0)   # core split (CORE_PARALLEL on multi-TC chips)
    j = pl.program_id(1)   # triplet-tile step within this core

    @pl.when(j == 0)
    def _():
        # Grid-invariant slab: copy ONCE per core, single-buffered (no 2x
        # pipeline buffers for a constant-index block).
        pltpu.sync_copy(e_hbm, e_vmem)
        acc_ref[...] = jnp.zeros_like(acc_ref)

    e_stack = e_vmem[...]                       # (D, 3B) bf16
    b = e_stack.shape[1] // 3
    idx = idx_ref[...]                          # (3, tile) int32

    # ap | an fused along lanes: column t selects (a_t, p_t), column tile+t
    # selects (a_t, n_t).
    pos = jnp.concatenate([idx[0:1, :], idx[0:1, :]], axis=1)   # (1, 2*tile)
    neg = jnp.concatenate([idx[1:2, :], idx[2:3, :]], axis=1)   # (1, 2*tile)

    # +/-1 selection matrix built directly in bf16 (exact values in {-1,0,1}).
    row = jax.lax.broadcasted_iota(jnp.int32, (b, 2 * tile), 0)
    w = ((row == pos).astype(jnp.bfloat16)
         - (row == neg).astype(jnp.bfloat16))                   # (B, 2*tile)
    # Repeat along the contraction axis to match the stacked bf16x3 components.
    w3 = jnp.concatenate([w, w, w], axis=0)                     # (3B, 2*tile)

    # Single fused MXU pass: gather + difference, 3B-deep contraction.
    d = jnp.dot(e_stack, w3, preferred_element_type=jnp.float32)  # (D, 2*tile)

    s = jnp.sum(d * d, axis=0, keepdims=True)                   # (1, 2*tile)
    ap = s[:, :tile]
    an = s[:, tile:]
    loss = jnp.maximum(ap - an + jnp.float32(margin), 0.0)      # (1, tile)

    # Padding mask BEFORE accumulation (padded lanes would add `margin` each).
    col = (c * steps + j) * tile + jax.lax.broadcasted_iota(
        jnp.int32, (1, tile), 1)
    loss = jnp.where(col < total, loss, 0.0)

    acc_ref[...] += loss


def _bf16x3_stack(e_t_f32):
    """Exact-ish bf16x3 decomposition of f32, stacked along the batch axis."""
    c0 = e_t_f32.astype(jnp.bfloat16)
    r1 = e_t_f32 - c0.astype(jnp.float32)
    c1 = r1.astype(jnp.bfloat16)
    r2 = r1 - c1.astype(jnp.float32)
    c2 = r2.astype(jnp.bfloat16)
    return jnp.concatenate([c0, c1, c2], axis=1)        # (D, 3B) bf16


def _mxu_gather_loss_nc(embeddings, triplets, margin, *, T, tile, NC):
    B, D = embeddings.shape

    # Lane-dense tiling over triplets; clamp so tiny T / huge D don't over-pad.
    tile = _round_up(max(128, int(tile)), 128)
    tile = min(tile, _round_up(_cdiv(T, NC), 128))
    # Keep the (D, 2*tile) f32 matmul result + (3B, 2*tile) bf16 weight modest.
    cap = (4 << 20) // max(1, 8 * D + 12 * B)
    tile = max(128, min(tile, (cap // 128) * 128))
    steps = _cdiv(T, NC * tile)
    T_pad = NC * steps * tile

    # Grid-invariant stacked embeddings, computed ONCE in the wrapper (hoisted
    # off the per-step VPU path).
    e_t = embeddings.astype(jnp.float32).T               # (D, B)
    e_stack = _bf16x3_stack(e_t)                         # (D, 3B) bf16

    # Triplet indices, transposed + padded to (3, T_pad).  Padded columns point
    # at row 0 and are zeroed inside the kernel before accumulation.
    trip_t = jnp.pad(triplets.astype(jnp.int32).T, ((0, 0), (0, T_pad - T)))

    if NC > 1:
        dims = (getattr(pltpu, "CORE_PARALLEL", "parallel"),
                getattr(pltpu, "ARBITRARY", "arbitrary"))
    else:
        dims = ("arbitrary", "arbitrary")

    partials = pl.pallas_call(
        partial(_mxu_gather_kernel, margin=float(margin), total=T,
                tile=tile, steps=steps),
        out_shape=jax.ShapeDtypeStruct((NC, 1, tile), jnp.float32),
        grid_spec=pltpu.PrefetchScalarGridSpec(
            num_scalar_prefetch=0,
            grid=(NC, steps),
            in_specs=[
                # Stacked embeddings stay in HBM; one manual copy at j==0.
                pl.BlockSpec(memory_space=pl.ANY),
                # Triplet indices: lane-dense (3, tile) blocks.
                pl.BlockSpec((3, tile), lambda c, j: (0, c * steps + j)),
            ],
            # Per-core partial-sum row; block resident across the j axis.
            out_specs=pl.BlockSpec((None, 1, tile), lambda c, j: (c, 0, 0)),
            scratch_shapes=[pltpu.VMEM((D, 3 * B), jnp.bfloat16)],
        ),
        compiler_params=pltpu.CompilerParams(
            dimension_semantics=dims,
            vmem_limit_bytes=32 * 1024 * 1024),
    )(e_stack, trip_t)

    return jnp.sum(partials) / jnp.float32(T)


def _mxu_gather_loss(embeddings, triplets, margin, *, T, tile, num_core_splits):
    NC = int(num_core_splits) if num_core_splits else _num_tensorcores()
    NC = max(1, NC)
    if NC > 1:
        try:
            return _mxu_gather_loss_nc(embeddings, triplets, margin,
                                       T=T, tile=tile, NC=NC)
        except Exception:
            pass   # conservative fallback: single-core grid below
    return _mxu_gather_loss_nc(embeddings, triplets, margin,
                               T=T, tile=tile, NC=1)


# -----------------------------------------------------------------------------
# Strategy 2 (large B): streamed gather.  O(T*D) HBM traffic instead of the
# O(T*B*D) MXU gather; per-tile losses are written as lane-dense (1, tile) rows.
# -----------------------------------------------------------------------------
def _stream_kernel(a_ref, p_ref, n_ref, o_ref, *, margin, total, tile):
    j = pl.program_id(0)
    a = a_ref[...]                              # (D, tile) f32
    p = p_ref[...]
    n = n_ref[...]
    d_ap = a - p
    d_an = a - n
    ap = jnp.sum(d_ap * d_ap, axis=0, keepdims=True)   # (1, tile)
    an = jnp.sum(d_an * d_an, axis=0, keepdims=True)
    loss = jnp.maximum(ap - an + jnp.float32(margin), 0.0)
    col = j * tile + jax.lax.broadcasted_iota(jnp.int32, (1, tile), 1)
    o_ref[...] = jnp.where(col < total, loss, 0.0)


def _streamed_gather_loss(embeddings, triplets, margin, *, T, tile):
    B, D = embeddings.shape
    tile = _round_up(max(128, int(tile)), 128)
    tile = min(tile, _round_up(T, 128))
    # 3 double-buffered (D, tile) f32 input streams: keep them ~<= 8 MiB.
    cap = (8 << 20) // max(1, 24 * D)
    tile = max(128, min(tile, (cap // 128) * 128))
    steps = _cdiv(T, tile)
    T_pad = steps * tile

    trip = jnp.pad(triplets.astype(jnp.int32), ((0, T_pad - T), (0, 0)))
    e32 = embeddings.astype(jnp.float32)
    # TODO(synk): the row gather itself stays an XLA take; a per-triplet Pallas
    #             gather would need one tiny block per grid step.
    a_t = jnp.take(e32, trip[:, 0], axis=0).T           # (D, T_pad)
    p_t = jnp.take(e32, trip[:, 1], axis=0).T
    n_t = jnp.take(e32, trip[:, 2], axis=0).T

    out = pl.pallas_call(
        partial(_stream_kernel, margin=float(margin), total=T, tile=tile),
        out_shape=jax.ShapeDtypeStruct((1, T_pad), jnp.float32),
        grid_spec=pltpu.PrefetchScalarGridSpec(
            num_scalar_prefetch=0,
            grid=(steps,),
            in_specs=[pl.BlockSpec((D, tile), lambda j: (0, j)),
                      pl.BlockSpec((D, tile), lambda j: (0, j)),
                      pl.BlockSpec((D, tile), lambda j: (0, j))],
            out_specs=pl.BlockSpec((1, tile), lambda j: (0, j)),
        ),
        compiler_params=pltpu.CompilerParams(
            dimension_semantics=("parallel",),
            vmem_limit_bytes=32 * 1024 * 1024),
    )(a_t, p_t, n_t)

    return jnp.sum(out) / jnp.float32(T)


# -----------------------------------------------------------------------------
# Public wrapper: matches the PyTorch forward — returns (losses.mean(), len(T)).
# -----------------------------------------------------------------------------
def online_triplet_loss(embeddings, triplets, margin, *, tile=1024,
                        strategy="auto", gather_batch_threshold=256,
                        num_core_splits=None):
    T = int(triplets.shape[0])
    if T == 0:
        # torch.mean of an empty tensor is NaN; keep that semantic explicit.
        return jnp.float32(jnp.nan), 0
    B, D = embeddings.shape

    if strategy == "auto":
        strategy = "mxu" if B <= int(gather_batch_threshold) else "stream"

    if strategy == "mxu":
        loss = _mxu_gather_loss(embeddings, triplets, margin, T=T, tile=tile,
                                num_core_splits=num_core_splits)
    else:
        loss = _streamed_gather_loss(embeddings, triplets, margin, T=T,
                                     tile=tile)
    return loss, T


# -----------------------------------------------------------------------------
# Pure-JAX reference (mirror of the PyTorch forward) for the sanity check.
# -----------------------------------------------------------------------------
def reference_loss(embeddings, triplets, margin):
    a = embeddings[triplets[:, 0]]
    p = embeddings[triplets[:, 1]]
    n = embeddings[triplets[:, 2]]
    ap = jnp.sum((a - p) ** 2, axis=1)
    an = jnp.sum((a - n) ** 2, axis=1)
    losses = jnp.maximum(ap - an + margin, 0.0)
    return jnp.mean(losses), triplets.shape[0]


if __name__ == "__main__":
    key = jax.random.PRNGKey(0)
    B, D = 8, 32                      # 8 embeddings, hidden dim 32
    margin = 1.0

    embeddings = jax.random.normal(key, (B, D), dtype=jnp.float32)
    labels = np.array([0, 0, 1, 1, 2, 2, 3, 3], dtype=np.int32)

    triplets_np = all_triplets(labels)          # (T, 3) = (24, 3)
    triplets = jnp.asarray(triplets_np)

    ref_loss, ref_n = reference_loss(embeddings, triplets, margin)

    # Auto strategy -> MXU-gather path at this tiny batch size.
    loss_mxu, n_mxu = online_triplet_loss(embeddings, triplets, margin)
    loss_mxu = jax.block_until_ready(loss_mxu)
    assert n_mxu == ref_n
    np.testing.assert_allclose(np.asarray(loss_mxu), np.asarray(ref_loss),
                               rtol=1e-5, atol=1e-5)

    # Large-batch streamed-gather path, forced here for a correctness check.
    loss_str, n_str = online_triplet_loss(embeddings, triplets, margin,
                                          strategy="stream")
    loss_str = jax.block_until_ready(loss_str)
    assert n_str == ref_n
    np.testing.assert_allclose(np.asarray(loss_str), np.asarray(ref_loss),
                               rtol=1e-5, atol=1e-5)

    print("KERNEL_OK")
</pallas_src>

<mosaic_0001>
module attributes {stable_mosaic.version = 11 : i64} {
  func.func @_mxu_gather_kernel(%arg0: i32, %arg1: i32, %arg2: memref<32x24xbf16, #tpu.memory_space<any>>, %arg3: memref<3x128xi32, #tpu.memory_space<vmem>>, %arg4: memref<1x1x128xf32, #tpu.memory_space<vmem>>, %arg5: memref<32x24xbf16, #tpu.memory_space<vmem>>) attributes {dimension_semantics = [#tpu.dimension_semantics<arbitrary>, #tpu.dimension_semantics<arbitrary>], iteration_bounds = array<i64: 1, 1>, scalar_prefetch = 0 : i64, scratch_operands = 1 : i64, tpu.core_type = #tpu.core_type<tc>, window_params = [{}, {transform_indices = @transform_1, window_bounds = array<i64: 3, 128>}, {transform_indices = @transform_2, window_bounds = array<i64: 1, 1, 128>}]} {
    %c0_i32 = arith.constant 0 : i32
    %0 = arith.cmpi eq, %arg1, %c0_i32 : i32
    %1 = arith.extui %0 : i1 to i32
    %c0_i32_0 = arith.constant 0 : i32
    %2 = arith.cmpi ne, %1, %c0_i32_0 : i32
    scf.if %2 {
      "tpu.region"() ({
        %55 = tpu.sem_alloc : memref<!tpu.dma_semaphore, #tpu.memory_space<semaphore_mem>>
        tpu.enqueue_dma source(%arg2 : memref<32x24xbf16, #tpu.memory_space<any>>) target(%arg5 : memref<32x24xbf16, #tpu.memory_space<vmem>>) target_semaphore(%55 : memref<!tpu.dma_semaphore, #tpu.memory_space<semaphore_mem>>)
        tpu.wait_dma2 semaphore(%55 : memref<!tpu.dma_semaphore, #tpu.memory_space<semaphore_mem>>) src(%arg2 : memref<32x24xbf16, #tpu.memory_space<any>>) dst(%arg5 : memref<32x24xbf16, #tpu.memory_space<vmem>>)
        tpu.yield
      }) : () -> ()
      %cst_14 = arith.constant 0.000000e+00 : f32
      %51 = vector.broadcast %cst_14 : f32 to vector<1x128xf32>
      %c0_15 = arith.constant 0 : index
      %c0_16 = arith.constant 0 : index
      %c0_17 = arith.constant 0 : index
      %52 = vector.load %arg4[%c0_15, %c0_16, %c0_17] : memref<1x1x128xf32, #tpu.memory_space<vmem>>, vector<1x1x128xf32>
      %53 = vector.shape_cast %52 : vector<1x1x128xf32> to vector<1x128xf32>
      %54 = vector.shape_cast %51 : vector<1x128xf32> to vector<1x1x128xf32>
      tpu.vector_store %arg4[%c0_15, %c0_16, %c0_17], %54 {strides = array<i32>} : memref<1x1x128xf32, #tpu.memory_space<vmem>>, vector<1x1x128xf32>,
    } else {
    }
    %c0 = arith.constant 0 : index
    %c0_1 = arith.constant 0 : index
    %3 = vector.load %arg5[%c0, %c0_1] : memref<32x24xbf16, #tpu.memory_space<vmem>>, vector<32x24xbf16>
    %c0_2 = arith.constant 0 : index
    %c0_3 = arith.constant 0 : index
    %4 = vector.load %arg3[%c0_2, %c0_3] : memref<3x128xi32, #tpu.memory_space<vmem>>, vector<3x128xi32>
    %5 = vector.extract_strided_slice %4 {offsets = [0, 0], sizes = [1, 128], strides = [1, 1]} : vector<3x128xi32> to vector<1x128xi32>
    %6 = vector.extract_strided_slice %4 {offsets = [0, 0], sizes = [1, 128], strides = [1, 1]} : vector<3x128xi32> to vector<1x128xi32>
    %7 = tpu.concatenate %5, %6 in 1 : vector<1x128xi32>, vector<1x128xi32> -> vector<1x256xi32>
    %8 = vector.extract_strided_slice %4 {offsets = [1, 0], sizes = [1, 128], strides = [1, 1]} : vector<3x128xi32> to vector<1x128xi32>
    %9 = vector.extract_strided_slice %4 {offsets = [2, 0], sizes = [1, 128], strides = [1, 1]} : vector<3x128xi32> to vector<1x128xi32>
    %10 = tpu.concatenate %8, %9 in 1 : vector<1x128xi32>, vector<1x128xi32> -> vector<1x256xi32>
    %11 = tpu.iota {dimensions = array<i32: 0>} : vector<8x256xi32>
    %12 = vector.broadcast %7 : vector<1x256xi32> to vector<8x256xi32>
    %13 = arith.cmpi eq, %11, %12 : vector<8x256xi32>
    %14 = arith.extui %13 : vector<8x256xi1> to vector<8x256xi32>
    %15 = arith.sitofp %14 : vector<8x256xi32> to vector<8x256xf32>
    %16 = arith.truncf %15 : vector<8x256xf32> to vector<8x256xbf16>
    %17 = vector.broadcast %10 : vector<1x256xi32> to vector<8x256xi32>
    %18 = arith.cmpi eq, %11, %17 : vector<8x256xi32>
    %19 = arith.extui %18 : vector<8x256xi1> to vector<8x256xi32>
    %20 = arith.sitofp %19 : vector<8x256xi32> to vector<8x256xf32>
    %21 = arith.truncf %20 : vector<8x256xf32> to vector<8x256xbf16>
    %22 = arith.subf %16, %21 : vector<8x256xbf16>
    %23 = tpu.concatenate %22, %22, %22 in 0 : vector<8x256xbf16>, vector<8x256xbf16>, vector<8x256xbf16> -> vector<24x256xbf16>
    %cst = arith.constant dense<0.000000e+00> : vector<32x256xf32>
    %24 = tpu.matmul %3, %23, %cst {dimension_numbers = #tpu.dot_dimension_numbers<[1], [0], [0], [1], [0, 0, 1, 1], [], []>} : vector<32x24xbf16>, vector<24x256xbf16>, vector<32x256xf32> -> vector<32x256xf32>
    %25 = arith.mulf %24, %24 : vector<32x256xf32>
    %cst_4 = arith.constant dense<0.000000e+00> : vector<256xf32>
    %26 = vector.multi_reduction <add>, %25, %cst_4 [0] : vector<32x256xf32> to vector<256xf32>
    %27 = vector.shape_cast %26 : vector<256xf32> to vector<1x256xf32>
    %28 = vector.extract_strided_slice %27 {offsets = [0, 0], sizes = [1, 128], strides = [1, 1]} : vector<1x256xf32> to vector<1x128xf32>
    %29 = vector.extract_strided_slice %27 {offsets = [0, 128], sizes = [1, 128], strides = [1, 1]} : vector<1x256xf32> to vector<1x128xf32>
    %30 = arith.subf %28, %29 : vector<1x128xf32>
    %cst_5 = arith.constant 1.000000e+00 : f32
    %31 = vector.broadcast %cst_5 : f32 to vector<1x128xf32>
    %32 = arith.addf %30, %31 : vector<1x128xf32>
    %cst_6 = arith.constant 0.000000e+00 : f32
    %33 = vector.broadcast %cst_6 : f32 to vector<1x128xf32>
    %34 = arith.maximumf %32, %33 : vector<1x128xf32>
    %c1_i32 = arith.constant 1 : i32
    %35 = arith.muli %arg0, %c1_i32 : i32
    %36 = arith.addi %35, %arg1 : i32
    %c128_i32 = arith.constant 128 : i32
    %37 = arith.muli %36, %c128_i32 : i32
    %38 = tpu.iota {dimensions = array<i32: 1>} : vector<1x128xi32>
    %39 = vector.broadcast %37 : i32 to vector<1x128xi32>
    %40 = arith.addi %39, %38 : vector<1x128xi32>
    %c24_i32 = arith.constant 24 : i32
    %41 = vector.broadcast %c24_i32 : i32 to vector<1x128xi32>
    %42 = arith.cmpi slt, %40, %41 : vector<1x128xi32>
    %cst_7 = arith.constant 0.000000e+00 : f32
    %43 = vector.broadcast %cst_7 : f32 to vector<1x128xf32>
    %44 = arith.select %42, %34, %43 : vector<1x128xi1>, vector<1x128xf32>
    %c0_8 = arith.constant 0 : index
    %c0_9 = arith.constant 0 : index
    %c0_10 = arith.constant 0 : index
    %45 = vector.load %arg4[%c0_8, %c0_9, %c0_10] : memref<1x1x128xf32, #tpu.memory_space<vmem>>, vector<1x1x128xf32>
    %46 = vector.shape_cast %45 : vector<1x1x128xf32> to vector<1x128xf32>
    %47 = arith.addf %46, %44 : vector<1x128xf32>
    %c0_11 = arith.constant 0 : index
    %c0_12 = arith.constant 0 : index
    %c0_13 = arith.constant 0 : index
    %48 = vector.load %arg4[%c0_11, %c0_12, %c0_13] : memref<1x1x128xf32, #tpu.memory_space<vmem>>, vector<1x1x128xf32>
    %49 = vector.shape_cast %48 : vector<1x1x128xf32> to vector<1x128xf32>
    %50 = vector.shape_cast %47 : vector<1x128xf32> to vector<1x1x128xf32>
    tpu.vector_store %arg4[%c0_11, %c0_12, %c0_13], %50 {strides = array<i32>} : memref<1x1x128xf32, #tpu.memory_space<vmem>>, vector<1x1x128xf32>,
    return
  }
  func.func @transform_1(%arg0: i32, %arg1: i32) -> (i32, i32) {
    %c1_i32 = arith.constant 1 : i32
    %0 = arith.muli %arg0, %c1_i32 : i32
    %1 = arith.addi %0, %arg1 : i32
    %c0_i32 = arith.constant 0 : i32
    %c0_i32_0 = arith.constant 0 : i32
    return %c0_i32, %1 : i32, i32
  }
  func.func @transform_2(%arg0: i32, %arg1: i32) -> (i32, i32, i32) {
    %c0_i32 = arith.constant 0 : i32
    %c0_i32_0 = arith.constant 0 : i32
    %c0_i32_1 = arith.constant 0 : i32
    return %arg0, %c0_i32, %c0_i32_0 : i32, i32, i32
  }
}

</mosaic_0001>

<bundles_post_ra>
// kernel: tpu_custom_call.1
= control target key start
LH: loop header
LB: loop body
LE: loop exit
PB: predicated region body
PF: predicated region fallthrough
CT: control target
= control target key end

     0   :  { %7 = vsyncpa [#allocation4], 0  ;;  %s338_s0 = inlined_call_operand.vmem [shape: bf16[32,24], index: 0, kind: input, shape index: {}]   ;;  %s339_s1 = inlined_call_operand.vmem [shape: s32[3,128], index: 1, kind: input, shape index: {}]   ;;  %s340_s2 = inlined_call_operand.hbm [shape: f32[1,1,128], index: 2, kind: output, shape index: {}]  }
   0x1   :  { %v64_v0 = vld [vmem:[%s338_s0] sm:$0xff]  ;;  %v66_v1 = vld [vmem:[%s338_s0 + $0x8] sm:$0xff] }
   0x2   :  { %75 = vsyncadd [#allocation5], 256 }
   0x3   :  { %293 = dma.done.wait [#allocation5], 256 }
   0x4   :  { %294 = vsyncadd [#allocation5], 4294967040  ;;  %v83_v2 = vld [vmem:[%s339_s1] sm:$0x7]  ;;  %v85_v3 = vlaneseq  ;;  %v297_v4 = vmov 0.0   ;;  %v298_v5 = vmov 0  }
   0x5   :  { %80 = vst [vmem:[#allocation3] sm:$0x1] %v297_v4  ;;  %169 = vmatprep.mubr.bf16.mxu0 %v298_v5  ;;  %179 = vmatprep.mubr.bf16.mxu1 %v298_v5  ;;  %v84_v6 = vrot.slane %v83_v2, 1  ;;  %vm117_vm3 = vcmask 1043456   ;;  %vm126_vm4 = vcmask 195584   ;;  %s299_s0 = smov [#allocation3]  }
   0x6   :  { %v86_v7 = vshrl.u32 %v85_v3, 7  ;;  %v222_v60 = vand.u32 127, %v85_v3  ;;  %s236_s1 = sshll.u32 %s299_s0, 4  ;;  %s237_s1 = int_to_ptr.vmem [resolvable:$true] %s236_s1 }
   0x7   :  { %s271_s15 = scalar_lea.vmem %s237_s1, 16  ;;  %s275_s16 = scalar_lea.vmem %s237_s1, 32 }
   0x8   :  { %v89_v8 = vsub.s32 0, %v86_v7  ;;  %v97_v9 = vsub.s32 1, %v86_v7  ;;  %vm225_vm5 = vcmp.lt.s32.totalorder %v222_v60, 24  ;;  %p272_p0 = scmp.ne.s32.totalorder %s237_s1, %s271_s15  ;;  %p276_p1 = scmp.lt.s32.totalorder %s237_s1, %s237_s1 }
   0x9   :  { %p277_p2 = scmp.lt.s32.totalorder %s275_s16, %s271_s15 }
   0xa   :  { %v90_v10 = vrot.slane %v83_v2, %v89_v8  ;;  %v102_v11 = vrot.slane %v84_v6, %v97_v9  ;;  %v98_v12 = vrot.slane %v83_v2, %v97_v9 }
   0xb   :  { %p278_p3 = por %p277_p2, %p276_p1 }
   0xc   :  { %vm91_vm0 = vcmp.eq.s32.totalorder %v86_v7, %v90_v10  ;;  %vm104_vm1 = vcmp.eq.s32.totalorder %v86_v7, %v102_v11  ;;  %vm103_vm2 = vcmp.eq.s32.totalorder %v86_v7, %v98_v12 }
   0xd   :  { %v258_v13 = vsel %vm91_vm0, 1.0, %v297_v4  ;;  %v260_v14 = vsel %vm104_vm1, 1.0, %v297_v4  ;;  %v259_v15 = vsel %vm103_vm2, 1.0, %v297_v4  ;;  %p279_p4 = pnand %p278_p3, %p272_p0 }
   0xe   :  { %v94_v16 = vpack.c.bf16 %v258_v13, %v258_v13  ;;  %v110_v17 = vpack.c.bf16 %v260_v14, %v260_v14  ;;  %v109_v18 = vpack.c.bf16 %v259_v15, %v259_v15 }
  0x10   :  { %v112_v19 = vsub.bf16 %v94_v16, %v110_v17  ;;  %v111_v20 = vsub.bf16 %v94_v16, %v109_v18 }
  0x12   :  { %v116_v21 = vrot.slane %v112_v19, 4  ;;  %v115_v22 = vrot.slane %v111_v20, 4  ;;  %v133_v25 = vsel %vm117_vm3, %v111_v20, 0 }
  0x14   :  { %v124_v23 = vsel %vm117_vm3, %v112_v19, %v116_v21  ;;  %v120_v24 = vsel %vm117_vm3, %v111_v20, %v115_v22 }
  0x15   :  { %137 = vmatprep.subr.bf16.mxu0 %v124_v23  ;;  %264 = vmatprep.subr.bf16.mxu1 %v124_v23 }
  0x16   :  { %138 = vmatpush1.bf16.msra.mxu0 %v120_v24  ;;  %266 = vmatpush1.bf16.msra.mxu1 %v120_v24 }
  0x17   :  { %261 = vmatprep.subr.msk.bf16.mxu0 %vm117_vm3, %v112_v19  ;;  %265 = vmatprep.subr.msk.bf16.mxu1 %vm117_vm3, %v112_v19 }
  0x1a   :  { %140 = vmatpush1.bf16.msra.mxu0 %v133_v25  ;;  %267 = vmatpush1.bf16.msra.mxu1 %v133_v25 }
  0x1d   :  { %262 = vmatmul.mubr.msk.bf16.vlgmr.msra.gmra.mrb[0].mxu0 %vm126_vm4, %v64_v0  ;;  %263 = vmatmul.mubr.msk.bf16.vlgmr.msra.gmra.mrb[0].mxu1 %vm126_vm4, %v66_v1  ;;  %v227_v0 = vld [vmem:[#allocation3] sm:$0x1] }
  0xf0   :  { %v171_v26 = vpop.f32.mrb[0].mxu0  ;;  %v181_v27 = vpop.f32.mrb[0].mxu1 }
  0xf1   :  { %v173_v28 = vpop.f32.mrb[1].mxu0  ;;  %v183_v29 = vpop.f32.mrb[1].mxu1  ;;  %v190_v32 = vmul.f32 %v171_v26, %v171_v26  ;;  %v194_v33 = vmul.f32 %v181_v27, %v181_v27 }
  0xf2   :  { %v175_v30 = vpop.f32.mrb[2].mxu0  ;;  %v185_v31 = vpop.f32.mrb[2].mxu1  ;;  %v191_v37 = vmul.f32 %v173_v28, %v173_v28  ;;  %v195_v38 = vmul.f32 %v183_v29, %v183_v29 }
  0xf3   :  { %v192_v34 = vmul.f32 %v175_v30, %v175_v30  ;;  %v177_v35 = vpop.f32.mrb[3].mxu0  ;;  %v187_v36 = vpop.f32.mrb[3].mxu1  ;;  %v196_v42 = vmul.f32 %v185_v31, %v185_v31 }
  0xf4   :  { %v193_v39 = vmul.f32 %v177_v35, %v177_v35  ;;  %v197_v44 = vmul.f32 %v187_v36, %v187_v36 }
  0xf5   :  { %v198_v40 = vadd.f32 %v192_v34, %v190_v32 }
  0xf6   :  { %v207_v41 = vadd.f32 %v193_v39, %v191_v37 }
  0xf7   :  { %v199_v43 = vadd.f32 %v198_v40, %v194_v33 }
  0xf8   :  { %v208_v45 = vadd.f32 %v207_v41, %v195_v38 }
  0xf9   :  { %v200_v46 = vadd.f32 %v199_v43, %v196_v42 }
  0xfa   :  { %v209_v47 = vadd.f32 %v208_v45, %v197_v44 }
  0xfb   :  { %v201_v48 = vrot.slane %v200_v46, 4 }
  0xfc   :  { %v210_v49 = vrot.slane %v209_v47, 4 }
  0xfd   :  { %v202_v50 = vadd.f32 %v201_v48, %v200_v46 }
  0xfe   :  { %v211_v51 = vadd.f32 %v210_v49, %v209_v47 }
  0xff   :  { %v203_v52 = vrot.slane %v202_v50, 2 }
 0x100   :  { %v212_v53 = vrot.slane %v211_v51, 2 }
 0x101   :  { %v204_v54 = vadd.f32 %v203_v52, %v202_v50 }
 0x102   :  { %v213_v55 = vadd.f32 %v212_v53, %v211_v51 }
 0x103   :  { %v205_v56 = vrot.slane %v204_v54, 1 }
 0x104   :  { %v214_v57 = vrot.slane %v213_v55, 1 }
 0x105   :  { %v206_v58 = vadd.f32 %v205_v56, %v204_v54 }
 0x106   :  { %v215_v59 = vadd.f32 %v214_v57, %v213_v55 }
 0x108   :  { %v216_v61 = vsub.f32 %v206_v58, %v215_v59 }
 0x10a   :  { %v217_v62 = vadd.f32 1.0, %v216_v61 }
 0x10c   :  { %v218_v63 = vmax.f32 %v217_v62, 0.0 }
 0x10e   :  { %v226_v1 = vsel %vm225_vm5, %v218_v63, 0.0 }
 0x10f   :  { %v228_v2 = vadd.f32 %v227_v0, %v226_v1 }
 0x111   :  { %229 = vst [vmem:[#allocation3] sm:$0x1] %v228_v2 }
 0x112   :  { %282 = shalt.err (!%p279_p4)
}
 0x113   :  { %s283_s19 = scalar_lea.hbm %s340_s2, 16 }
 0x114   :  { %p284_p5 = scmp.ne.s32.totalorder %s340_s2, %s283_s19  ;;  %p287_p6 = scmp.lt.u32.totalorder %s283_s19, %s340_s2 }
 0x116   :  { %p289_p7 = pnand %p287_p6, %p284_p5 }
 0x118   :  { %292 = shalt.err (!%p289_p7)
}
 0x119   :  { %239 = dma.vmem_to_hbm [thread:$0]  %s237_s1, 16, %s340_s2, [#allocation4]  }
 0x11a   :  { %295 = dma.done.wait [#allocation4], 16  }
 0x11b   :  { %296 = vsyncadd [#allocation4], 4294967280 }
 0x11c   :  { %243 = vsyncpa [#allocation4], 1 }

</bundles_post_ra>
